<compile_context>
chip_gen: v7x
topology: tpu7x:2x2x1
jax: 0.10.0
libtpu: 0.0.40
codegen_flags: <defaults>
</compile_context>

<pallas_src>
import jax
import jax.numpy as jnp
from jax import lax
from jax.experimental import pallas as pl
from jax.experimental.pallas import tpu as pltpu

LANE = 128     # fc1 hidden width == TPU lane width
TM_MAX = 512   # max rows per grid block (tile well under scoped-VMEM default)


# ----------------------------------------------------------------------------
# Fused kernel: one row-block per grid step.
#   o[1, 1, TM] = sigmoid( w2 . leaky_relu(x @ w1 + b1)^T + b2 )
# ----------------------------------------------------------------------------
def _final_classification_kernel(x_ref, w1_ref, b1_ref, w2_ref, b2_ref, o_ref):
    # fc1: (TM, D) @ (D, 128) on the MXU, f32 accumulation.
    h = jnp.dot(x_ref[...], w1_ref[...], preferred_element_type=jnp.float32)
    h = h + b1_ref[...]
    # LeakyReLU (PyTorch default negative_slope = 0.01).
    h = jnp.where(h > 0, h, 0.01 * h)
    # TODO(synk): nn.Dropout(0.5) is treated as eval-mode identity (no RNG mask / 2x rescale).
    # fc2, transposed so the single logit per row lands lane-dense:
    #   (1, 128) contracted with (TM, 128) on the shared 128-dim -> (1, TM).
    y = lax.dot_general(w2_ref[...], h, (((1,), (1,)), ((), ())),
                        preferred_element_type=jnp.float32)
    y = y + b2_ref[...]            # (1, 1) broadcasts over (1, TM)
    o_ref[0] = jax.nn.sigmoid(y)   # o_ref block is (1, 1, TM); lane-dense store


# ----------------------------------------------------------------------------
# Parameter construction (PyTorch nn.Linear-style init, stored kernel-ready:
# w1 pre-transposed to (din, 128); w2 kept in PyTorch's native (1, 128) layout)
# ----------------------------------------------------------------------------
def init_final_classification(key, input_dim):
    k1, k2, k3, k4 = jax.random.split(key, 4)
    bound1 = 1.0 / (input_dim ** 0.5)
    bound2 = 1.0 / (LANE ** 0.5)
    w1 = jax.random.uniform(k1, (input_dim, LANE), jnp.float32, -bound1, bound1)
    b1 = jax.random.uniform(k2, (1, LANE), jnp.float32, -bound1, bound1)
    w2 = jax.random.uniform(k3, (1, LANE), jnp.float32, -bound2, bound2)
    b2 = jax.random.uniform(k4, (1, 1), jnp.float32, -bound2, bound2)
    return {"w1": w1, "b1": b1, "w2": w2, "b2": b2}


def _round_up(v, m):
    return ((v + m - 1) // m) * m


# ----------------------------------------------------------------------------
# Wrapper: single pallas_call with a parallel row grid; weights stay resident.
# ----------------------------------------------------------------------------
@jax.jit
def final_classification(params, x):
    n, d = x.shape
    n_pad = max(_round_up(n, 8), 8)
    tm = n_pad if n_pad <= TM_MAX else TM_MAX
    n_pad = _round_up(n_pad, tm)
    num_blocks = n_pad // tm
    if n_pad != n:
        x = jnp.pad(x, ((0, n_pad - n), (0, 0)))

    y = pl.pallas_call(
        _final_classification_kernel,
        out_shape=jax.ShapeDtypeStruct((num_blocks, 1, tm), jnp.float32),
        grid_spec=pltpu.PrefetchScalarGridSpec(
            num_scalar_prefetch=0,
            grid=(num_blocks,),
            in_specs=[
                pl.BlockSpec((tm, d), lambda i: (i, 0)),     # x: streamed per block
                pl.BlockSpec((d, LANE), lambda i: (0, 0)),   # w1: resident (constant block idx)
                pl.BlockSpec((1, LANE), lambda i: (0, 0)),   # b1: resident
                pl.BlockSpec((1, LANE), lambda i: (0, 0)),   # w2: resident
                pl.BlockSpec((1, 1), lambda i: (0, 0)),      # b2: resident
            ],
            out_specs=pl.BlockSpec((1, 1, tm), lambda i: (i, 0, 0)),
        ),
        compiler_params=pltpu.CompilerParams(
            dimension_semantics=("parallel",)),
    )(x, params["w1"], params["b1"], params["w2"], params["b2"])

    # Lane-packed logits -> (n, 1); padded rows (if any) are discarded.
    return y.reshape(n_pad, 1)[:n]


# ----------------------------------------------------------------------------
# Pure-JAX reference (mirrors the PyTorch forward in eval mode)
# ----------------------------------------------------------------------------
def final_classification_ref(params, x):
    h = x @ params["w1"] + params["b1"]
    h = jnp.where(h > 0, h, 0.01 * h)
    y = h @ params["w2"].T + params["b2"]
    return jax.nn.sigmoid(y)


# ----------------------------------------------------------------------------
# Demo
# ----------------------------------------------------------------------------
if __name__ == "__main__":
    input_dim = 64  # e.g. 2 * embed_dim from the surrounding model

    root = jax.random.PRNGKey(0)
    kp, kx1, kx2 = jax.random.split(root, 3)
    params = init_final_classification(kp, input_dim)

    # Small, latency-bound case (single block, tm = 8).
    x_small = jax.random.normal(kx1, (8, input_dim), jnp.float32)
    out_small = final_classification(params, x_small)
    jax.block_until_ready(out_small)
    ref_small = final_classification_ref(params, x_small)
    assert out_small.shape == (8, 1)
    assert bool(jnp.all(jnp.isfinite(out_small)))
    assert bool(jnp.all((out_small > 0.0) & (out_small < 1.0)))
    assert bool(jnp.allclose(out_small, ref_small, atol=1e-5, rtol=1e-5))

    # Multi-block case exercising the row grid + padding (600 rows -> 2 blocks of 512).
    x_big = jax.random.normal(kx2, (600, input_dim), jnp.float32)
    out_big = final_classification(params, x_big)
    jax.block_until_ready(out_big)
    ref_big = final_classification_ref(params, x_big)
    assert out_big.shape == (600, 1)
    assert bool(jnp.all(jnp.isfinite(out_big)))
    assert bool(jnp.allclose(out_big, ref_big, atol=1e-5, rtol=1e-5))

    print("KERNEL_OK")
</pallas_src>

<mosaic_0001>
module attributes {stable_mosaic.version = 11 : i64} {
  func.func @_final_classification_kernel(%arg0: i32, %arg1: memref<8x64xf32, #tpu.memory_space<vmem>>, %arg2: memref<64x128xf32, #tpu.memory_space<vmem>>, %arg3: memref<1x128xf32, #tpu.memory_space<vmem>>, %arg4: memref<1x128xf32, #tpu.memory_space<vmem>>, %arg5: memref<1x1xf32, #tpu.memory_space<vmem>>, %arg6: memref<1x1x8xf32, #tpu.memory_space<vmem>>) attributes {dimension_semantics = [#tpu.dimension_semantics<parallel>], iteration_bounds = array<i64: 1>, scalar_prefetch = 0 : i64, scratch_operands = 0 : i64, tpu.core_type = #tpu.core_type<tc>, window_params = [{transform_indices = @transform_0, window_bounds = array<i64: 8, 64>}, {pipeline_mode = #tpu.pipeline_mode<synchronous>, transform_indices = @transform_1, window_bounds = array<i64: 64, 128>}, {pipeline_mode = #tpu.pipeline_mode<synchronous>, transform_indices = @transform_2, window_bounds = array<i64: 1, 128>}, {pipeline_mode = #tpu.pipeline_mode<synchronous>, transform_indices = @transform_3, window_bounds = array<i64: 1, 128>}, {pipeline_mode = #tpu.pipeline_mode<synchronous>, transform_indices = @transform_4, window_bounds = array<i64: 1, 1>}, {transform_indices = @transform_5, window_bounds = array<i64: 1, 1, 8>}]} {
    %c0 = arith.constant 0 : index
    %c0_0 = arith.constant 0 : index
    %0 = vector.load %arg1[%c0, %c0_0] : memref<8x64xf32, #tpu.memory_space<vmem>>, vector<8x64xf32>
    %c0_1 = arith.constant 0 : index
    %c0_2 = arith.constant 0 : index
    %1 = vector.load %arg2[%c0_1, %c0_2] : memref<64x128xf32, #tpu.memory_space<vmem>>, vector<64x128xf32>
    %cst = arith.constant dense<0.000000e+00> : vector<8x128xf32>
    %2 = tpu.matmul %0, %1, %cst {dimension_numbers = #tpu.dot_dimension_numbers<[1], [0], [0], [1], [0, 0, 1, 1], [], []>} : vector<8x64xf32>, vector<64x128xf32>, vector<8x128xf32> -> vector<8x128xf32>
    %c0_3 = arith.constant 0 : index
    %c0_4 = arith.constant 0 : index
    %3 = vector.load %arg3[%c0_3, %c0_4] : memref<1x128xf32, #tpu.memory_space<vmem>>, vector<1x128xf32>
    %4 = vector.broadcast %3 : vector<1x128xf32> to vector<8x128xf32>
    %5 = arith.addf %2, %4 : vector<8x128xf32>
    %cst_5 = arith.constant 0.000000e+00 : f32
    %6 = vector.broadcast %cst_5 : f32 to vector<8x128xf32>
    %7 = arith.cmpf ogt, %5, %6 : vector<8x128xf32>
    %cst_6 = arith.constant 0.00999999977 : f32
    %8 = vector.broadcast %cst_6 : f32 to vector<8x128xf32>
    %9 = arith.mulf %8, %5 : vector<8x128xf32>
    %10 = arith.select %7, %5, %9 : vector<8x128xi1>, vector<8x128xf32>
    %c0_7 = arith.constant 0 : index
    %c0_8 = arith.constant 0 : index
    %11 = vector.load %arg4[%c0_7, %c0_8] : memref<1x128xf32, #tpu.memory_space<vmem>>, vector<1x128xf32>
    %cst_9 = arith.constant dense<0.000000e+00> : vector<1x8xf32>
    %12 = tpu.matmul %11, %10, %cst_9 {dimension_numbers = #tpu.dot_dimension_numbers<[1], [1], [0], [0], [0, 0, 1, 0], [], []>} : vector<1x128xf32>, vector<8x128xf32>, vector<1x8xf32> -> vector<1x8xf32>
    %c0_10 = arith.constant 0 : index
    %c0_11 = arith.constant 0 : index
    %13 = vector.load %arg5[%c0_10, %c0_11] : memref<1x1xf32, #tpu.memory_space<vmem>>, vector<1x1xf32>
    %14 = vector.broadcast %13 : vector<1x1xf32> to vector<1x8xf32>
    %15 = arith.addf %12, %14 : vector<1x8xf32>
    %16 = arith.negf %15 : vector<1x8xf32>
    %17 = math.exp %16 : vector<1x8xf32>
    %cst_12 = arith.constant 1.000000e+00 : f32
    %18 = vector.broadcast %cst_12 : f32 to vector<1x8xf32>
    %19 = arith.addf %18, %17 : vector<1x8xf32>
    %20 = arith.divf %18, %19 : vector<1x8xf32>
    %c0_13 = arith.constant 0 : index
    %c0_14 = arith.constant 0 : index
    %c0_15 = arith.constant 0 : index
    %21 = vector.load %arg6[%c0_13, %c0_14, %c0_15] : memref<1x1x8xf32, #tpu.memory_space<vmem>>, vector<1x1x8xf32>
    %22 = vector.shape_cast %21 : vector<1x1x8xf32> to vector<1x8xf32>
    %23 = vector.shape_cast %20 : vector<1x8xf32> to vector<1x1x8xf32>
    tpu.vector_store %arg6[%c0_13, %c0_14, %c0_15], %23 {strides = array<i32>} : memref<1x1x8xf32, #tpu.memory_space<vmem>>, vector<1x1x8xf32>,
    return
  }
  func.func @transform_0(%arg0: i32) -> (i32, i32) {
    %c0_i32 = arith.constant 0 : i32
    %c0_i32_0 = arith.constant 0 : i32
    return %arg0, %c0_i32 : i32, i32
  }
  func.func @transform_1(%arg0: i32) -> (i32, i32) {
    %c0_i32 = arith.constant 0 : i32
    %c0_i32_0 = arith.constant 0 : i32
    %c0_i32_1 = arith.constant 0 : i32
    return %c0_i32, %c0_i32_0 : i32, i32
  }
  func.func @transform_2(%arg0: i32) -> (i32, i32) {
    %c0_i32 = arith.constant 0 : i32
    %c0_i32_0 = arith.constant 0 : i32
    %c0_i32_1 = arith.constant 0 : i32
    return %c0_i32, %c0_i32_0 : i32, i32
  }
  func.func @transform_3(%arg0: i32) -> (i32, i32) {
    %c0_i32 = arith.constant 0 : i32
    %c0_i32_0 = arith.constant 0 : i32
    %c0_i32_1 = arith.constant 0 : i32
    return %c0_i32, %c0_i32_0 : i32, i32
  }
  func.func @transform_4(%arg0: i32) -> (i32, i32) {
    %c0_i32 = arith.constant 0 : i32
    %c0_i32_0 = arith.constant 0 : i32
    %c0_i32_1 = arith.constant 0 : i32
    return %c0_i32, %c0_i32_0 : i32, i32
  }
  func.func @transform_5(%arg0: i32) -> (i32, i32, i32) {
    %c0_i32 = arith.constant 0 : i32
    %c0_i32_0 = arith.constant 0 : i32
    %c0_i32_1 = arith.constant 0 : i32
    return %arg0, %c0_i32, %c0_i32_0 : i32, i32, i32
  }
}

</mosaic_0001>

<bundles_post_ra>
// kernel: final_classification.1
= control target key start
LH: loop header
LB: loop body
LE: loop exit
PB: predicated region body
PF: predicated region fallthrough
CT: control target
= control target key end

     0   :  { %s419_s0 = inlined_call_operand.vmem [shape: f32[8,64], index: 0, kind: input, shape index: {}]   ;;  %s420_s1 = inlined_call_operand.hbm [shape: f32[64,128], index: 1, kind: input, shape index: {}]   ;;  %s421_s2 = inlined_call_operand.vmem [shape: f32[1,128], index: 2, kind: input, shape index: {}]   ;;  %s422_s3 = inlined_call_operand.vmem [shape: f32[1,128], index: 3, kind: input, shape index: {}]   ;;  %s423_s4 = inlined_call_operand.<no memory space> [shape: f32[1,1], index: 4, kind: input, shape index: {}]   ;;  %s424_s5 = inlined_call_operand.hbm [shape: f32[1,1,8], index: 5, kind: output, shape index: {}]  }
   0x1   :  { %v10_v0 = vstv %s423_s4 }
   0x2   :  { %11 = vst [vmem:[#allocation2] sm:$0x1] %v10_v0 }
   0x3   :  { %12 = vsyncpa [#allocation4], 0 }
   0x4   :  { %13 = vsyncpa [#allocation5], 0  ;;  %s345_s20 = smov [#allocation3]   ;;  %s297_s24 = scalar_lea.hbm %s420_s1, 1024 }
   0x5   :  { %s21_s21 = sshll.u32 %s345_s20, 4  ;;  %p298_p0 = scmp.ne.s32.totalorder %s420_s1, %s297_s24  ;;  %s22_s21 = int_to_ptr.vmem [resolvable:$true] %s21_s21 }
   0x6   :  { %p301_p1 = scmp.lt.u32.totalorder %s297_s24, %s420_s1 }
   0x8   :  { %p303_p2 = pnand %p301_p1, %p298_p0 }
   0xa   :  { %306 = shalt.err (!%p303_p2)
}
   0xb   :  { %s307_s4 = scalar_lea.vmem %s22_s21, 1024  ;;  %p312_p4 = scmp.lt.s32.totalorder %s22_s21, %s22_s21 }
   0xc   :  { %p308_p3 = scmp.ne.s32.totalorder %s22_s21, %s307_s4  ;;  %p313_p5 = scmp.lt.s32.totalorder %s307_s4, %s307_s4 }
   0xe   :  { %p314_p6 = por %p313_p5, %p312_p4 }
  0x10   :  { %p315_p7 = pnand %p314_p6, %p308_p3 }
  0x12   :  { %318 = shalt.err (!%p315_p7)
}
  0x13   :  { %s346_s29 = smov 128   ;;  %s347_s30 = smov 8  }
  0x14   :  { %27 = dma.hbm_to_vmem [thread:$0]  %s420_s1, 1024, %s22_s21, [#allocation4], %s346_s29, %s346_s29, %s347_s30  }
  0x15   :  { %341 = dma.done.wait [#allocation4], 1024  }
  0x16   :  { %342 = vsyncadd [#allocation4], 4294966272  ;;  %v348_v1 = vmov 0.0|0.0   ;;  %vm349_vm0 = vmmov 0   ;;  %v350_v2 = vmov 0.0   ;;  %v38_v3 = vld [vmem:[#allocation3] sm:$0xff]  ;;  %v137_v25 = vlaneseq }
  0x17   :  { %272 = vmatprep.subr.bf16.mxu0 %v348_v1  ;;  %264 = vmatprep.mubr.msk.f32.mxu0 %vm349_vm0, %v350_v2  ;;  %v39_v4 = vld [vmem:[#allocation3 + $0x8] sm:$0xff]  ;;  %v40_v5 = vld [vmem:[#allocation3 + $0x10] sm:$0xff]  ;;  %v41_v7 = vld [vmem:[#allocation3 + $0x18] sm:$0xff]  ;;  %vm53_vm1 = vcmask 523264   ;;  %v351_v17 = vmov 0   ;;  %vm217_vm3 = vcmask 57344  }
  0x18   :  { %267 = vmatprep.subr.mxu1 %v350_v2  ;;  %269 = vmatprep.mubr.msk.f32.mxu1 %vm349_vm0, %v350_v2  ;;  %v273_v6 = vpack.c.bf16 %v39_v4, %v38_v3  ;;  %v276_v8 = vpack.c.bf16 %v41_v7, %v40_v5  ;;  %v42_v9 = vld [vmem:[#allocation3 + $0x20] sm:$0xff]  ;;  %v43_v10 = vld [vmem:[#allocation3 + $0x28] sm:$0xff]  ;;  %v44_v12 = vld [vmem:[#allocation3 + $0x30] sm:$0xff]  ;;  %v138_v26 = vshrl.u32 %v137_v25, 7 }
  0x19   :  { %v279_v11 = vpack.c.bf16 %v43_v10, %v42_v9  ;;  %v45_v13 = vld [vmem:[#allocation3 + $0x38] sm:$0xff]  ;;  %292 = vset.pattern.permute.xlu0 %v351_v17 }
  0x1a   :  { %274 = vmatpush3.bf16.msra.mxu0 %v273_v6  ;;  %v282_v14 = vpack.c.bf16 %v45_v13, %v44_v12  ;;  %v37_v15 = vld [vmem:[%s419_s0] sm:$0xff]  ;;  %v139_v27 = vsub.s32 0, %v138_v26  ;;  %s352_s0 = smov [#allocation6]  }
  0x1b   :  { %275 = vmatprep.subr.bf16.mxu0 %v348_v1  ;;  %v131_v16 = vld [vmem:[#allocation2] sm:$0x1] }
  0x1c   :  { %134 = vperm.xlu0 %292, %v131_v16   ;;  %v234_v18 = vld [vmem:[%s421_s2] ss:$0 sm:$0xff]  ;;  %s225_s2 = sshll.u32 %s352_s0, 4  ;;  %s226_s2 = int_to_ptr.vmem [resolvable:$true] %s225_s2 }
  0x1d   :  { %v130_v24 = vld [vmem:[%s422_s3] sm:$0x1]  ;;  %s319_s3 = scalar_lea.vmem %s226_s2, 16  ;;  %s323_s13 = scalar_lea.vmem %s226_s2, 32 }
  0x1e   :  { %277 = vmatpush3.bf16.msra.mxu0 %v276_v8  ;;  %p320_p8 = scmp.ne.s32.totalorder %s226_s2, %s319_s3  ;;  %p324_p9 = scmp.lt.s32.totalorder %s226_s2, %s226_s2 }
  0x1f   :  { %278 = vmatprep.subr.bf16.mxu0 %v348_v1  ;;  %p325_p10 = scmp.lt.s32.totalorder %s323_s13, %s319_s3 }
  0x21   :  { %p326_p11 = por %p325_p10, %p324_p9 }
  0x22   :  { %280 = vmatpush3.bf16.msra.mxu0 %v279_v11 }
  0x23   :  { %281 = vmatprep.subr.bf16.mxu0 %v348_v1  ;;  %p327_p12 = pnand %p326_p11, %p320_p8 }
  0x26   :  { %283 = vmatpush3.bf16.msra.mxu0 %v282_v14 }
  0x29   :  { %265 = vmatmul.mubr.msk.f32.vlgmr.msra.gmra.mrb[0].mxu0 %vm53_vm1, %v37_v15 }
  0x9b   :  { %v135_v28 = vpop.permute.xlu0 %134 }
  0x9c   :  { %v140_v29 = vrot.slane %v135_v28, %v139_v27 }
  0xfc   :  { %v123_v19 = vpop.f32.mrb[0].mxu0 }
  0xfd   :  { %v124_v20 = vadd.f32 %v234_v18, %v123_v19  ;;  %v266_v21 = vpop.f32.mrb[1].mxu0 }
  0xff   :  { %vm127_vm2 = vcmp.gt.f32.partialorder %v124_v20, 0.0  ;;  %v128_v22 = vmul.f32 0.01, %v124_v20 }
 0x101   :  { %v129_v23 = vsel %vm127_vm2, %v124_v20, %v128_v22 }
 0x102   :  { %268 = vmatpush3.xpose.msra.mxu1 %v129_v23 }
 0x105   :  { %270 = vmatmul.mubr.f32.vlgmr.msra.gmra.mrb[0].mxu1 %v130_v24 }
 0x1d8   :  { %v207_v30 = vpop.f32.mrb[0].mxu1 }
 0x1d9   :  { %v208_v31 = vadd.f32 %v207_v30, %v140_v29  ;;  %v271_v32 = vpop.f32.mrb[1].mxu1 }
 0x1db   :  { %v236_v33 = vmul.f32 -1.442695, %v208_v31 }
 0x1dd   :  { %293 = vpow2.f32 %v236_v33 }
 0x1e7   :  { %v294_v34 = vpop.eup %293 }
 0x1e8   :  { %v214_v35 = vadd.f32 1.0, %v294_v34 }
 0x1ea   :  { %295 = vrcp.f32 %v214_v35 }
 0x1f4   :  { %v296_v36 = vpop.eup %295 }
 0x1f5   :  { %218 = vst.msk [vmem:[#allocation6] sm:$0x1] %vm217_vm3, %v296_v36 }
 0x1f6   :  { %330 = shalt.err (!%p327_p12)
}
 0x1f7   :  { %s331_s16 = scalar_lea.hbm %s424_s5, 16 }
 0x1f8   :  { %p332_p13 = scmp.ne.s32.totalorder %s424_s5, %s331_s16  ;;  %p335_p0 = scmp.lt.u32.totalorder %s331_s16, %s424_s5 }
 0x1fa   :  { %p337_p1 = pnand %p335_p0, %p332_p13 }
 0x1fc   :  { %340 = shalt.err (!%p337_p1)
}
 0x1fd   :  { %228 = dma.vmem_to_hbm [thread:$0]  %s226_s2, 16, %s424_s5, [#allocation5]  }
 0x1fe   :  { %343 = dma.done.wait [#allocation5], 16  }
 0x1ff   :  { %344 = vsyncadd [#allocation5], 4294967280 }
 0x200   :  { %232 = vsyncpa [#allocation4], 1 }
 0x201   :  { %233 = vsyncpa [#allocation5], 1 }

</bundles_post_ra>
